<compile_context>
chip_gen: v5e
topology: v5e:2x2
jax: 0.10.0
libtpu: 0.0.40
codegen_flags: <defaults>
</compile_context>

<pallas_src>
import functools

import jax
import jax.numpy as jnp
from jax.experimental import pallas as pl
from jax.experimental.pallas import tpu as pltpu


def _cell_area_mse_kernel(pred_ref, tgt_ref, area_ref, out_ref, *,
                          num_ch, tile_h, full_h, mask_tail):
    # pred/tgt blocks: [C, tile_h, W]; area block: [tile_h, W]; out: [1, 1, W]
    w = area_ref.shape[-1]
    area = area_ref[...].astype(jnp.float32)                  # [tile_h, W]

    if mask_tail:
        # Only the ragged last block has rows past H; out-of-bounds block
        # contents are unspecified (may be NaN/Inf), so the select must be
        # applied to the squared-error*area term, not just to `area`.
        limit = full_h - pl.program_id(0) * tile_h             # scalar
        row_ids = jax.lax.broadcasted_iota(jnp.int32, (tile_h, 1), 0)
        row_mask = row_ids < limit                             # [tile_h, 1]
    else:
        row_mask = None

    def channel_partial(c):
        # Small per-channel slab (~block_bytes / C); nothing block-sized is
        # ever materialized or re-stored across channel iterations.
        d = pred_ref[c].astype(jnp.float32) - tgt_ref[c].astype(jnp.float32)
        term = d * d * area                                    # [tile_h, W]
        if row_mask is not None:
            term = jnp.where(row_mask, term, 0.0)
        return jnp.sum(term, axis=0, keepdims=True)            # [1, W]

    acc0 = jnp.zeros((1, w), jnp.float32)
    if num_ch <= 8:
        acc = acc0
        for c in range(num_ch):                                # static unroll
            acc = acc + channel_partial(c)
    else:
        acc = jax.lax.fori_loop(
            0, num_ch, lambda c, a: a + channel_partial(c), acc0, unroll=4)

    out_ref[...] = acc[None]                                   # (1, 1, W)


def _choose_tile_h(h, w, c, itemsize, *, target_block_bytes, min_block_bytes):
    """Rows per grid step: <= ~4 MiB/input, >= ~1 MiB/input, >= ~8 grid steps."""
    bytes_per_row = max(1, c * w * itemsize)                   # per input array
    tile_target = max(1, target_block_bytes // bytes_per_row)  # VMEM cap
    tile_floor = max(1, -(-min_block_bytes // bytes_per_row))  # amortize step cost
    tile_steps = max(1, h // 8)                                # >= ~8 grid steps
    tile_h = min(tile_target, max(tile_floor, tile_steps))
    if tile_h >= h:
        return h
    tile_h = max(8, (tile_h // 8) * 8)                         # clean sublane tiling
    return min(tile_h, h)


def cell_area_weighted_mse_loss(invar, outvar, area, *,
                                target_block_bytes=4 << 20,
                                min_block_bytes=1 << 20):
    """loss = mean_{h,w}( mean_c((invar - outvar)^2)[h,w] * area[h,w] ).

    invar, outvar: [C, H, W]; area: [H, W]. Returns a float32 scalar.
    """
    c_dim, h_dim, w_dim = invar.shape
    assert outvar.shape == (c_dim, h_dim, w_dim)
    assert area.shape == (h_dim, w_dim)

    in_itemsize = jnp.dtype(invar.dtype).itemsize
    area_itemsize = jnp.dtype(area.dtype).itemsize

    tile_h = _choose_tile_h(h_dim, w_dim, c_dim, in_itemsize,
                            target_block_bytes=target_block_bytes,
                            min_block_bytes=min_block_bytes)
    grid_h = pl.cdiv(h_dim, tile_h)
    mask_tail = (h_dim % tile_h) != 0

    # VMEM: double-buffered input blocks + small f32 temporaries + headroom.
    block_in_bytes = (2 * c_dim * tile_h * w_dim * in_itemsize
                      + tile_h * w_dim * area_itemsize)
    tmp_bytes = 4 * tile_h * w_dim * 4                 # per-channel f32 slabs
    vmem_need = 2 * block_in_bytes + tmp_bytes + (4 << 20)
    vmem_limit = int(min(max(vmem_need, 16 << 20), 48 << 20))

    kernel = functools.partial(_cell_area_mse_kernel, num_ch=c_dim,
                               tile_h=tile_h, full_h=h_dim, mask_tail=mask_tail)

    flops = (3 * c_dim + 2) * h_dim * w_dim
    bytes_accessed = ((2 * c_dim * in_itemsize + area_itemsize) * h_dim * w_dim
                      + grid_h * w_dim * 4)

    partials = pl.pallas_call(
        kernel,
        out_shape=jax.ShapeDtypeStruct((grid_h, 1, w_dim), jnp.float32),
        grid_spec=pltpu.PrefetchScalarGridSpec(
            num_scalar_prefetch=0,
            grid=(grid_h,),
            in_specs=[
                pl.BlockSpec((c_dim, tile_h, w_dim), lambda i: (0, i, 0)),
                pl.BlockSpec((c_dim, tile_h, w_dim), lambda i: (0, i, 0)),
                pl.BlockSpec((tile_h, w_dim), lambda i: (i, 0)),
            ],
            out_specs=pl.BlockSpec((1, 1, w_dim), lambda i: (i, 0, 0)),
        ),
        compiler_params=pltpu.CompilerParams(
            # Independent per-block partial sums -> megacore sharding on v7x.
            dimension_semantics=("parallel",),
            vmem_limit_bytes=vmem_limit,
        ),
        cost_estimate=pl.CostEstimate(flops=int(flops), transcendentals=0,
                                      bytes_accessed=int(bytes_accessed)),
    )(invar, outvar, area)

    # Tiny final reduction + both means folded into two exact f32 divides.
    total = jnp.sum(partials)
    return total / jnp.float32(c_dim) / jnp.float32(h_dim * w_dim)


def _reference(invar, outvar, area):
    loss = (invar.astype(jnp.float32) - outvar.astype(jnp.float32)) ** 2
    loss = loss.mean(axis=0)
    loss = loss * area.astype(jnp.float32)
    return loss.mean()


if __name__ == "__main__":
    key = jax.random.PRNGKey(0)
    k1, k2, k3 = jax.random.split(key, 3)

    C, H, W = 4, 16, 16
    invar = jax.random.normal(k1, (C, H, W), dtype=jnp.float32)
    outvar = jax.random.normal(k2, (C, H, W), dtype=jnp.float32)
    # Deterministic "cell area" parameter (cos-latitude-like weights), [H, W].
    area = 0.5 + jax.random.uniform(k3, (H, W), dtype=jnp.float32)

    loss_fn = jax.jit(cell_area_weighted_mse_loss)
    loss = jax.block_until_ready(loss_fn(invar, outvar, area))

    ref = _reference(invar, outvar, area)
    assert jnp.allclose(loss, ref, rtol=1e-5, atol=1e-6), (loss, ref)

    print("KERNEL_OK")
</pallas_src>

<mosaic_0001>
module attributes {stable_mosaic.version = 11 : i64} {
  func.func @_cell_area_mse_kernel(%arg0: i32, %arg1: memref<4x16x16xf32, #tpu.memory_space<vmem>>, %arg2: memref<4x16x16xf32, #tpu.memory_space<vmem>>, %arg3: memref<16x16xf32, #tpu.memory_space<vmem>>, %arg4: memref<1x1x16xf32, #tpu.memory_space<vmem>>) attributes {dimension_semantics = [#tpu.dimension_semantics<parallel>], iteration_bounds = array<i64: 1>, scalar_prefetch = 0 : i64, scratch_operands = 0 : i64, tpu.core_type = #tpu.core_type<tc>, window_params = [{transform_indices = @transform_0, window_bounds = array<i64: 4, 16, 16>}, {transform_indices = @transform_1, window_bounds = array<i64: 4, 16, 16>}, {transform_indices = @transform_2, window_bounds = array<i64: 16, 16>}, {transform_indices = @transform_3, window_bounds = array<i64: 1, 1, 16>}]} {
    %c0 = arith.constant 0 : index
    %c0_0 = arith.constant 0 : index
    %0 = vector.load %arg3[%c0, %c0_0] : memref<16x16xf32, #tpu.memory_space<vmem>>, vector<16x16xf32>
    %cst = arith.constant 0.000000e+00 : f32
    %1 = vector.broadcast %cst : f32 to vector<1x16xf32>
    %c0_1 = arith.constant 0 : index
    %c0_2 = arith.constant 0 : index
    %c0_3 = arith.constant 0 : index
    %2 = vector.load %arg1[%c0_1, %c0_2, %c0_3] : memref<4x16x16xf32, #tpu.memory_space<vmem>>, vector<1x16x16xf32>
    %3 = vector.shape_cast %2 : vector<1x16x16xf32> to vector<16x16xf32>
    %c0_4 = arith.constant 0 : index
    %c0_5 = arith.constant 0 : index
    %c0_6 = arith.constant 0 : index
    %4 = vector.load %arg2[%c0_4, %c0_5, %c0_6] : memref<4x16x16xf32, #tpu.memory_space<vmem>>, vector<1x16x16xf32>
    %5 = vector.shape_cast %4 : vector<1x16x16xf32> to vector<16x16xf32>
    %6 = arith.subf %3, %5 : vector<16x16xf32>
    %7 = arith.mulf %6, %6 : vector<16x16xf32>
    %8 = arith.mulf %7, %0 : vector<16x16xf32>
    %cst_7 = arith.constant dense<0.000000e+00> : vector<16xf32>
    %9 = vector.multi_reduction <add>, %8, %cst_7 [0] : vector<16x16xf32> to vector<16xf32>
    %10 = vector.shape_cast %9 : vector<16xf32> to vector<1x16xf32>
    %11 = arith.addf %1, %10 : vector<1x16xf32>
    %c1 = arith.constant 1 : index
    %c0_8 = arith.constant 0 : index
    %c0_9 = arith.constant 0 : index
    %12 = vector.load %arg1[%c1, %c0_8, %c0_9] : memref<4x16x16xf32, #tpu.memory_space<vmem>>, vector<1x16x16xf32>
    %13 = vector.shape_cast %12 : vector<1x16x16xf32> to vector<16x16xf32>
    %c1_10 = arith.constant 1 : index
    %c0_11 = arith.constant 0 : index
    %c0_12 = arith.constant 0 : index
    %14 = vector.load %arg2[%c1_10, %c0_11, %c0_12] : memref<4x16x16xf32, #tpu.memory_space<vmem>>, vector<1x16x16xf32>
    %15 = vector.shape_cast %14 : vector<1x16x16xf32> to vector<16x16xf32>
    %16 = arith.subf %13, %15 : vector<16x16xf32>
    %17 = arith.mulf %16, %16 : vector<16x16xf32>
    %18 = arith.mulf %17, %0 : vector<16x16xf32>
    %cst_13 = arith.constant dense<0.000000e+00> : vector<16xf32>
    %19 = vector.multi_reduction <add>, %18, %cst_13 [0] : vector<16x16xf32> to vector<16xf32>
    %20 = vector.shape_cast %19 : vector<16xf32> to vector<1x16xf32>
    %21 = arith.addf %11, %20 : vector<1x16xf32>
    %c2 = arith.constant 2 : index
    %c0_14 = arith.constant 0 : index
    %c0_15 = arith.constant 0 : index
    %22 = vector.load %arg1[%c2, %c0_14, %c0_15] : memref<4x16x16xf32, #tpu.memory_space<vmem>>, vector<1x16x16xf32>
    %23 = vector.shape_cast %22 : vector<1x16x16xf32> to vector<16x16xf32>
    %c2_16 = arith.constant 2 : index
    %c0_17 = arith.constant 0 : index
    %c0_18 = arith.constant 0 : index
    %24 = vector.load %arg2[%c2_16, %c0_17, %c0_18] : memref<4x16x16xf32, #tpu.memory_space<vmem>>, vector<1x16x16xf32>
    %25 = vector.shape_cast %24 : vector<1x16x16xf32> to vector<16x16xf32>
    %26 = arith.subf %23, %25 : vector<16x16xf32>
    %27 = arith.mulf %26, %26 : vector<16x16xf32>
    %28 = arith.mulf %27, %0 : vector<16x16xf32>
    %cst_19 = arith.constant dense<0.000000e+00> : vector<16xf32>
    %29 = vector.multi_reduction <add>, %28, %cst_19 [0] : vector<16x16xf32> to vector<16xf32>
    %30 = vector.shape_cast %29 : vector<16xf32> to vector<1x16xf32>
    %31 = arith.addf %21, %30 : vector<1x16xf32>
    %c3 = arith.constant 3 : index
    %c0_20 = arith.constant 0 : index
    %c0_21 = arith.constant 0 : index
    %32 = vector.load %arg1[%c3, %c0_20, %c0_21] : memref<4x16x16xf32, #tpu.memory_space<vmem>>, vector<1x16x16xf32>
    %33 = vector.shape_cast %32 : vector<1x16x16xf32> to vector<16x16xf32>
    %c3_22 = arith.constant 3 : index
    %c0_23 = arith.constant 0 : index
    %c0_24 = arith.constant 0 : index
    %34 = vector.load %arg2[%c3_22, %c0_23, %c0_24] : memref<4x16x16xf32, #tpu.memory_space<vmem>>, vector<1x16x16xf32>
    %35 = vector.shape_cast %34 : vector<1x16x16xf32> to vector<16x16xf32>
    %36 = arith.subf %33, %35 : vector<16x16xf32>
    %37 = arith.mulf %36, %36 : vector<16x16xf32>
    %38 = arith.mulf %37, %0 : vector<16x16xf32>
    %cst_25 = arith.constant dense<0.000000e+00> : vector<16xf32>
    %39 = vector.multi_reduction <add>, %38, %cst_25 [0] : vector<16x16xf32> to vector<16xf32>
    %40 = vector.shape_cast %39 : vector<16xf32> to vector<1x16xf32>
    %41 = arith.addf %31, %40 : vector<1x16xf32>
    %42 = vector.shape_cast %41 : vector<1x16xf32> to vector<1x1x16xf32>
    %c0_26 = arith.constant 0 : index
    %c0_27 = arith.constant 0 : index
    %c0_28 = arith.constant 0 : index
    %43 = vector.load %arg4[%c0_26, %c0_27, %c0_28] : memref<1x1x16xf32, #tpu.memory_space<vmem>>, vector<1x1x16xf32>
    tpu.vector_store %arg4[%c0_26, %c0_27, %c0_28], %42 {strides = array<i32>} : memref<1x1x16xf32, #tpu.memory_space<vmem>>, vector<1x1x16xf32>,
    return
  }
  func.func @transform_0(%arg0: i32) -> (i32, i32, i32) {
    %c0_i32 = arith.constant 0 : i32
    %c0_i32_0 = arith.constant 0 : i32
    %c0_i32_1 = arith.constant 0 : i32
    return %c0_i32, %arg0, %c0_i32_0 : i32, i32, i32
  }
  func.func @transform_1(%arg0: i32) -> (i32, i32, i32) {
    %c0_i32 = arith.constant 0 : i32
    %c0_i32_0 = arith.constant 0 : i32
    %c0_i32_1 = arith.constant 0 : i32
    return %c0_i32, %arg0, %c0_i32_0 : i32, i32, i32
  }
  func.func @transform_2(%arg0: i32) -> (i32, i32) {
    %c0_i32 = arith.constant 0 : i32
    %c0_i32_0 = arith.constant 0 : i32
    return %arg0, %c0_i32 : i32, i32
  }
  func.func @transform_3(%arg0: i32) -> (i32, i32, i32) {
    %c0_i32 = arith.constant 0 : i32
    %c0_i32_0 = arith.constant 0 : i32
    %c0_i32_1 = arith.constant 0 : i32
    return %arg0, %c0_i32, %c0_i32_0 : i32, i32, i32
  }
}

</mosaic_0001>

<bundles_post_ra>
// kernel: cell_area_weighted_mse_loss.1
= control target key start
LH: loop header
LB: loop body
LE: loop exit
PB: predicated region body
PF: predicated region fallthrough
CT: control target
= control target key end

     0   :  { %8 = vsyncpa [#allocation3], 0  ;;  %s284_s0 = inlined_call_operand.hbm [shape: f32[4,16,16], index: 0, kind: input, shape index: {}]   ;;  %s285_s1 = inlined_call_operand.hbm [shape: f32[4,16,16], index: 1, kind: input, shape index: {}]   ;;  %s286_s2 = inlined_call_operand.hbm [shape: f32[16,16], index: 2, kind: input, shape index: {}]   ;;  %s287_s3 = inlined_call_operand.vmem [shape: f32[1,1,16], index: 3, kind: output, shape index: {}]  }
   0x1   :  { %9 = vsyncpa [#allocation5], 0  ;;  %s27_s14 = sshll.u32 %s285_s1, 4  ;;  %s239_s15 = smov [#allocation4]   ;;  %s28_s14 = int_to_ptr.hbm [resolvable:$true] %s27_s14 }
   0x2   :  { %s29_s16 = sshll.u32 %s239_s15, 4  ;;  %s14_s19 = sshll.u32 %s284_s0, 4  ;;  %s30_s16 = int_to_ptr.vmem [resolvable:$true] %s29_s16  ;;  %s15_s19 = int_to_ptr.hbm [resolvable:$true] %s14_s19 }
   0x3   :  { %s240_s20 = smov 128   ;;  %s241_s21 = smov 8  }
   0x4   :  { %35 = dma.hbm_to_vmem [thread:$0]  %s28_s14, 1024, %s30_s16, [#allocation5], %s240_s20, %s240_s20, %s241_s21  }
   0x5   :  { %s242_s22 = smov [#allocation2]   ;;  %s40_s26 = sshll.u32 %s286_s2, 4  ;;  %s41_s26 = int_to_ptr.hbm [resolvable:$true] %s40_s26 }
   0x6   :  { %s16_s23 = sshll.u32 %s242_s22, 4  ;;  %s243_s1 = smov [#allocation6]   ;;  %s17_s23 = int_to_ptr.vmem [resolvable:$true] %s16_s23 }
   0x7   :  { %22 = dma.hbm_to_vmem [thread:$0]  %s15_s19, 1024, %s17_s23, [#allocation3], %s240_s20, %s240_s20, %s241_s21  }
   0x8   :  { %s42_s27 = sshll.u32 %s243_s1, 4  ;;  %s43_s27 = int_to_ptr.vmem [resolvable:$true] %s42_s27 }
   0x9   :  { %48 = dma.hbm_to_vmem [thread:$0]  %s41_s26, 256, %s43_s27, [#allocation5], %s240_s20, %s240_s20, %s241_s21  }
   0xa   :  { %235 = dma.done.wait [#allocation3], 1024  }
   0xb   :  { %236 = vsyncadd [#allocation3], 4294966272 }
   0xc   :  { %237 = dma.done.wait [#allocation5], 1280  }
   0xd   :  { %238 = vsyncadd [#allocation5], 4294966016  ;;  %v63_v0 = vld [vmem:[#allocation2] sm:$0xff]  ;;  %v62_v2 = vld [vmem:[#allocation6 + $0x8] sm:$0xff]  ;;  %vm73_vm0 = vcmask 130048   ;;  %vm150_vm1 = vcmask 122880  }
   0xe   :  { %v61_v1 = vld [vmem:[#allocation6] sm:$0xff]  ;;  %v64_v3 = vld [vmem:[#allocation2 + $0x8] sm:$0xff]  ;;  %v85_v8 = vld [vmem:[#allocation2 + $0x10] sm:$0xff] }
   0xf   :  { %v65_v4 = vld [vmem:[#allocation4] sm:$0xff]  ;;  %v66_v5 = vld [vmem:[#allocation4 + $0x8] sm:$0xff]  ;;  %v86_v9 = vld [vmem:[#allocation2 + $0x18] sm:$0xff] }
  0x10   :  { %v67_v6 = vsub.f32 %v63_v0, %v65_v4  ;;  %v68_v7 = vsub.f32 %v64_v3, %v66_v5  ;;  %v88_v10 = vld [vmem:[#allocation4 + $0x10] sm:$0xff]  ;;  %v89_v11 = vld [vmem:[#allocation4 + $0x18] sm:$0xff]  ;;  %v107_v13 = vld [vmem:[#allocation2 + $0x20] sm:$0xff] }
  0x11   :  { %v90_v12 = vsub.f32 %v85_v8, %v88_v10  ;;  %v108_v14 = vld [vmem:[#allocation2 + $0x28] sm:$0xff]  ;;  %v91_v17 = vsub.f32 %v86_v9, %v89_v11  ;;  %v110_v18 = vld [vmem:[#allocation4 + $0x20] sm:$0xff]  ;;  %v129_v20 = vld [vmem:[#allocation2 + $0x30] sm:$0xff] }
  0x12   :  { %v69_v15 = vmul.f32 %v67_v6, %v67_v6  ;;  %v70_v16 = vmul.f32 %v68_v7, %v68_v7  ;;  %v111_v19 = vld [vmem:[#allocation4 + $0x28] sm:$0xff]  ;;  %v112_v22 = vsub.f32 %v107_v13, %v110_v18  ;;  %v130_v24 = vld [vmem:[#allocation2 + $0x38] sm:$0xff]  ;;  %v132_v25 = vld [vmem:[#allocation4 + $0x30] sm:$0xff] }
  0x13   :  { %v92_v21 = vmul.f32 %v90_v12, %v90_v12  ;;  %v113_v23 = vsub.f32 %v108_v14, %v111_v19  ;;  %v133_v26 = vld [vmem:[#allocation4 + $0x38] sm:$0xff]  ;;  %v93_v29 = vmul.f32 %v91_v17, %v91_v17  ;;  %v134_v30 = vsub.f32 %v129_v20, %v132_v25 }
  0x14   :  { %v71_v27 = vmul.f32 %v69_v15, %v61_v1  ;;  %v72_v28 = vmul.f32 %v70_v16, %v62_v2  ;;  %v114_v32 = vmul.f32 %v112_v22, %v112_v22  ;;  %v135_v34 = vsub.f32 %v130_v24, %v133_v26 }
  0x15   :  { %v94_v31 = vmul.f32 %v92_v21, %v61_v1  ;;  %v115_v33 = vmul.f32 %v113_v23, %v113_v23  ;;  %v95_v37 = vmul.f32 %v93_v29, %v62_v2  ;;  %v136_v38 = vmul.f32 %v134_v30, %v134_v30 }
  0x16   :  { %v74_v35 = vsel %vm73_vm0, %v71_v27, 0.0  ;;  %v75_v36 = vsel %vm73_vm0, %v72_v28, 0.0  ;;  %v116_v41 = vmul.f32 %v114_v32, %v61_v1  ;;  %v137_v44 = vmul.f32 %v135_v34, %v135_v34 }
  0x17   :  { %v76_v39 = vadd.f32 %v75_v36, %v74_v35  ;;  %v96_v40 = vsel %vm73_vm0, %v94_v31, 0.0  ;;  %v117_v42 = vmul.f32 %v115_v33, %v62_v2  ;;  %v97_v43 = vsel %vm73_vm0, %v95_v37, 0.0 }
  0x18   :  { %v138_v45 = vmul.f32 %v136_v38, %v61_v1  ;;  %v98_v47 = vadd.f32 %v97_v43, %v96_v40  ;;  %v118_v48 = vsel %vm73_vm0, %v116_v41, 0.0  ;;  %v139_v51 = vmul.f32 %v137_v44, %v62_v2 }
  0x19   :  { %v77_v46 = vrot.slane %v76_v39, 4  ;;  %v119_v49 = vsel %vm73_vm0, %v117_v42, 0.0 }
  0x1a   :  { %v120_v50 = vadd.f32 %v119_v49, %v118_v48  ;;  %v140_v52 = vsel %vm73_vm0, %v138_v45, 0.0  ;;  %v99_v54 = vrot.slane %v98_v47, 4  ;;  %v141_v56 = vsel %vm73_vm0, %v139_v51, 0.0 }
  0x1b   :  { %v78_v53 = vadd.f32 %v77_v46, %v76_v39  ;;  %v142_v59 = vadd.f32 %v141_v56, %v140_v52 }
  0x1c   :  { %v121_v55 = vrot.slane %v120_v50, 4  ;;  %v100_v58 = vadd.f32 %v99_v54, %v98_v47 }
  0x1d   :  { %v79_v57 = vrot.slane %v78_v53, 2  ;;  %v143_v63 = vrot.slane %v142_v59, 4 }
  0x1e   :  { %v122_v60 = vadd.f32 %v121_v55, %v120_v50  ;;  %v101_v62 = vrot.slane %v100_v58, 2 }
  0x1f   :  { %v80_v61 = vadd.f32 %v79_v57, %v78_v53  ;;  %v144_v4 = vadd.f32 %v143_v63, %v142_v59 }
  0x20   :  { %v123_v0 = vrot.slane %v122_v60, 2  ;;  %v102_v3 = vadd.f32 %v101_v62, %v100_v58 }
  0x21   :  { %v81_v1 = vrot.slane %v80_v61, 1  ;;  %v145_v7 = vrot.slane %v144_v4, 2 }
  0x22   :  { %v124_v5 = vadd.f32 %v123_v0, %v122_v60  ;;  %v103_v6 = vrot.slane %v102_v3, 1 }
  0x23   :  { %v82_v2 = vadd.f32 %v81_v1, %v80_v61  ;;  %v146_v10 = vadd.f32 %v145_v7, %v144_v4 }
  0x24   :  { %v125_v8 = vrot.slane %v124_v5, 1  ;;  %v104_v9 = vadd.f32 %v103_v6, %v102_v3 }
  0x25   :  { %v147_v13 = vrot.slane %v146_v10, 1 }
  0x26   :  { %v126_v11 = vadd.f32 %v125_v8, %v124_v5  ;;  %v105_v12 = vadd.f32 %v104_v9, %v82_v2 }
  0x27   :  { %v148_v15 = vadd.f32 %v147_v13, %v146_v10 }
  0x28   :  { %v127_v14 = vadd.f32 %v126_v11, %v105_v12 }
  0x2a   :  { %v149_v16 = vadd.f32 %v148_v15, %v127_v14 }
  0x2c   :  { %151 = vst.msk [vmem:[%s287_s3] sm:$0x1] %vm150_vm1, %v149_v16 }
  0x2d   :  { %156 = vsyncpa [#allocation3], 1 }
  0x2e   :  { %157 = vsyncpa [#allocation5], 1 }

</bundles_post_ra>
